<compile_context>
chip_gen: v5e
topology: v5e:2x2
jax: 0.10.0
libtpu: 0.0.40
codegen_flags: <defaults>
</compile_context>

<pallas_src>
import functools

import jax
import jax.numpy as jnp
from jax.experimental import pallas as pl
from jax.experimental.pallas import tpu as pltpu


_TILE_CAP = 2048  # rows per batch tile; activations stay far below VMEM limits


def _round_up(x, m):
    return (x + m - 1) // m * m


def _choose_tile_b(batch):
    bp8 = _round_up(max(batch, 1), 8)
    if bp8 <= _TILE_CAP:
        return bp8                       # single tile: minimal fixed overhead
    # >= 2 tiles so the "parallel" batch axis can use both v7x TensorCores.
    return min(_TILE_CAP, _round_up(pl.cdiv(bp8, 2), 8))


def dqn_kernel(x_ref, w1_ref, b1_ref, w2_ref, b2_ref, w3_ref, b3_ref, o_ref):
    cdt = w1_ref.dtype  # matmul operand dtype (bf16 or f32); accumulation is f32
    # Layer 1: Linear + ReLU  (x already arrives in compute dtype -- no per-tile cast)
    h = jnp.dot(x_ref[...], w1_ref[...], preferred_element_type=jnp.float32)
    h = jnp.maximum(h + b1_ref[...], 0.0)
    # Layer 2: Linear + ReLU
    h = jnp.dot(h.astype(cdt), w2_ref[...], preferred_element_type=jnp.float32)
    h = jnp.maximum(h + b2_ref[...], 0.0)
    # Layer 3: Linear (no activation), lane-dense (128-padded) output width
    h = jnp.dot(h.astype(cdt), w3_ref[...], preferred_element_type=jnp.float32)
    o_ref[...] = (h + b3_ref[...]).astype(o_ref.dtype)


def prepare_params(params, compute_dtype=jnp.bfloat16):
    """One-time parameter preprocessing (hoisted off the forward path).

    Weights are (in_features, out_features) so the kernel computes y = x @ W + b.
    bf16 operands are the default on every TPU generation (v5e/v6e/v7x MXUs are
    bf16-native); accumulation stays f32. NOTE: hidden activations are also rounded
    to bf16 between layers in that mode. Biases stay f32, reshaped to (1, N).
    w3/b3 are zero-padded to a 128-multiple output width for lane-dense stores.
    """
    n_actions = params["w3"].shape[1]
    n_out_p = _round_up(n_actions, 128)
    w3 = params["w3"].astype(compute_dtype)
    b3 = params["b3"].reshape(1, -1).astype(jnp.float32)
    if n_out_p != n_actions:
        w3 = jnp.pad(w3, ((0, 0), (0, n_out_p - n_actions)))
        b3 = jnp.pad(b3, ((0, 0), (0, n_out_p - n_actions)))
    return {
        "w1": params["w1"].astype(compute_dtype),
        "b1": params["b1"].reshape(1, -1).astype(jnp.float32),
        "w2": params["w2"].astype(compute_dtype),
        "b2": params["b2"].reshape(1, -1).astype(jnp.float32),
        "w3": w3,
        "b3": b3,
    }


@functools.partial(jax.jit, static_argnames=("n_actions",))
def dqn_forward(x, prep, *, n_actions):
    """x: (B, n_observations). prep: output of prepare_params."""
    w1, b1 = prep["w1"], prep["b1"]   # (n_obs, 128),   (1, 128)
    w2, b2 = prep["w2"], prep["b2"]   # (128, 128),     (1, 128)
    w3, b3 = prep["w3"], prep["b3"]   # (128, n_out_p), (1, n_out_p)

    B, n_obs = x.shape
    hidden = w1.shape[1]
    n_out_p = w3.shape[1]

    # Cast x once here (bf16 by default) -> halves streamed-x HBM traffic.
    x = x.astype(w1.dtype)

    tile_b = _choose_tile_b(B)
    grid = (pl.cdiv(B, tile_b),)      # partial final block handled by Pallas

    resident = lambda a: pl.BlockSpec(a.shape, lambda i: (0,) * a.ndim)

    flops = 2 * B * (n_obs * hidden + hidden * hidden + hidden * n_out_p)
    bytes_accessed = (
        x.size * x.dtype.itemsize
        + sum(int(prep[k].size) * prep[k].dtype.itemsize
              for k in ("w1", "b1", "w2", "b2", "w3", "b3"))
        + B * n_out_p * 4)

    out = pl.pallas_call(
        dqn_kernel,
        out_shape=jax.ShapeDtypeStruct((B, n_out_p), jnp.float32),
        grid=grid,
        in_specs=[
            pl.BlockSpec((tile_b, n_obs), lambda i: (i, 0)),  # x: batch-tiled
            resident(w1), resident(b1),                       # weights / biases
            resident(w2), resident(b2),                       # stay VMEM-resident
            resident(w3), resident(b3),
        ],
        out_specs=pl.BlockSpec((tile_b, n_out_p), lambda i: (i, 0)),
        compiler_params=pltpu.CompilerParams(
            dimension_semantics=("parallel",)),
        cost_estimate=pl.CostEstimate(
            flops=flops, transcendentals=0, bytes_accessed=bytes_accessed),
    )(x, w1, b1, w2, b2, w3, b3)

    # Only the lane (action) dim may need slicing; batch dim is exact (no pad).
    return out[:, :n_actions] if n_out_p != n_actions else out


def init_dqn_params(key, n_observations, n_actions, hidden=128):
    """Deterministic init mimicking nn.Linear's U(-1/sqrt(fan_in), 1/sqrt(fan_in))."""
    ks = jax.random.split(key, 6)

    def lin(kw, kb, fan_in, fan_out):
        bound = 1.0 / jnp.sqrt(fan_in)
        w = jax.random.uniform(kw, (fan_in, fan_out), jnp.float32, -bound, bound)
        b = jax.random.uniform(kb, (fan_out,), jnp.float32, -bound, bound)
        return w, b

    w1, b1 = lin(ks[0], ks[1], n_observations, hidden)
    w2, b2 = lin(ks[2], ks[3], hidden, hidden)
    w3, b3 = lin(ks[4], ks[5], hidden, n_actions)
    return {"w1": w1, "b1": b1, "w2": w2, "b2": b2, "w3": w3, "b3": b3}


def dqn_reference(x, params):
    h = jnp.maximum(x @ params["w1"] + params["b1"], 0.0)
    h = jnp.maximum(h @ params["w2"] + params["b2"], 0.0)
    return h @ params["w3"] + params["b3"]


if __name__ == "__main__":
    n_observations, n_actions, batch = 8, 4, 2

    key = jax.random.PRNGKey(0)
    k_params, k_x, k_xl = jax.random.split(key, 3)
    params = init_dqn_params(k_params, n_observations, n_actions)

    x = jax.random.normal(k_x, (batch, n_observations), jnp.float32)
    ref = dqn_reference(x, params)

    # f32 operand path (exact-ish reference check).
    prep_f32 = prepare_params(params, jnp.float32)
    out = jax.block_until_ready(dqn_forward(x, prep_f32, n_actions=n_actions))
    assert out.shape == (batch, n_actions), out.shape
    assert jnp.allclose(out, ref, atol=1e-3, rtol=1e-3), (out, ref)

    # Default bf16 operand path (f32 accumulation) -- recommended on all generations.
    prep_bf16 = prepare_params(params)
    out_bf = jax.block_until_ready(dqn_forward(x, prep_bf16, n_actions=n_actions))
    assert out_bf.shape == (batch, n_actions), out_bf.shape
    assert jnp.allclose(out_bf, ref, atol=5e-2, rtol=5e-2), (out_bf, ref)

    # Larger, non-tile-multiple batch: exercises the multi-tile grid (>=2 tiles for
    # v7x megacore) and Pallas's masked partial final block (no explicit zero pad).
    big = 4100
    xl = jax.random.normal(k_xl, (big, n_observations), jnp.float32)
    refl = dqn_reference(xl, params)
    outl = jax.block_until_ready(dqn_forward(xl, prep_f32, n_actions=n_actions))
    assert outl.shape == (big, n_actions), outl.shape
    assert jnp.allclose(outl, refl, atol=1e-3, rtol=1e-3), (outl, refl)

    print("KERNEL_OK")
</pallas_src>

<mosaic_0001>
module attributes {stable_mosaic.version = 11 : i64} {
  func.func @dqn_kernel(%arg0: i32, %arg1: memref<8x8xf32, #tpu.memory_space<vmem>>, %arg2: memref<8x128xf32, #tpu.memory_space<vmem>>, %arg3: memref<1x128xf32, #tpu.memory_space<vmem>>, %arg4: memref<128x128xf32, #tpu.memory_space<vmem>>, %arg5: memref<1x128xf32, #tpu.memory_space<vmem>>, %arg6: memref<128x128xf32, #tpu.memory_space<vmem>>, %arg7: memref<1x128xf32, #tpu.memory_space<vmem>>, %arg8: memref<8x128xf32, #tpu.memory_space<vmem>>) attributes {dimension_semantics = [#tpu.dimension_semantics<parallel>], iteration_bounds = array<i64: 1>, scalar_prefetch = 0 : i64, scratch_operands = 0 : i64, tpu.core_type = #tpu.core_type<tc>, window_params = [{transform_indices = @transform_0, window_bounds = array<i64: 8, 8>}, {pipeline_mode = #tpu.pipeline_mode<synchronous>, transform_indices = @transform_1, window_bounds = array<i64: 8, 128>}, {pipeline_mode = #tpu.pipeline_mode<synchronous>, transform_indices = @transform_2, window_bounds = array<i64: 1, 128>}, {pipeline_mode = #tpu.pipeline_mode<synchronous>, transform_indices = @transform_3, window_bounds = array<i64: 128, 128>}, {pipeline_mode = #tpu.pipeline_mode<synchronous>, transform_indices = @transform_4, window_bounds = array<i64: 1, 128>}, {pipeline_mode = #tpu.pipeline_mode<synchronous>, transform_indices = @transform_5, window_bounds = array<i64: 128, 128>}, {pipeline_mode = #tpu.pipeline_mode<synchronous>, transform_indices = @transform_6, window_bounds = array<i64: 1, 128>}, {transform_indices = @transform_7, window_bounds = array<i64: 8, 128>}]} {
    %c0 = arith.constant 0 : index
    %c0_0 = arith.constant 0 : index
    %0 = vector.load %arg1[%c0, %c0_0] : memref<8x8xf32, #tpu.memory_space<vmem>>, vector<8x8xf32>
    %c0_1 = arith.constant 0 : index
    %c0_2 = arith.constant 0 : index
    %1 = vector.load %arg2[%c0_1, %c0_2] : memref<8x128xf32, #tpu.memory_space<vmem>>, vector<8x128xf32>
    %cst = arith.constant dense<0.000000e+00> : vector<8x128xf32>
    %2 = tpu.matmul %0, %1, %cst {dimension_numbers = #tpu.dot_dimension_numbers<[1], [0], [0], [1], [0, 0, 1, 1], [], []>} : vector<8x8xf32>, vector<8x128xf32>, vector<8x128xf32> -> vector<8x128xf32>
    %c0_3 = arith.constant 0 : index
    %c0_4 = arith.constant 0 : index
    %3 = vector.load %arg3[%c0_3, %c0_4] : memref<1x128xf32, #tpu.memory_space<vmem>>, vector<1x128xf32>
    %4 = vector.broadcast %3 : vector<1x128xf32> to vector<8x128xf32>
    %5 = arith.addf %2, %4 : vector<8x128xf32>
    %cst_5 = arith.constant 0.000000e+00 : f32
    %6 = vector.broadcast %cst_5 : f32 to vector<8x128xf32>
    %7 = arith.maximumf %5, %6 : vector<8x128xf32>
    %c0_6 = arith.constant 0 : index
    %c0_7 = arith.constant 0 : index
    %8 = vector.load %arg4[%c0_6, %c0_7] : memref<128x128xf32, #tpu.memory_space<vmem>>, vector<128x128xf32>
    %cst_8 = arith.constant dense<0.000000e+00> : vector<8x128xf32>
    %9 = tpu.matmul %7, %8, %cst_8 {dimension_numbers = #tpu.dot_dimension_numbers<[1], [0], [0], [1], [0, 0, 1, 1], [], []>} : vector<8x128xf32>, vector<128x128xf32>, vector<8x128xf32> -> vector<8x128xf32>
    %c0_9 = arith.constant 0 : index
    %c0_10 = arith.constant 0 : index
    %10 = vector.load %arg5[%c0_9, %c0_10] : memref<1x128xf32, #tpu.memory_space<vmem>>, vector<1x128xf32>
    %11 = vector.broadcast %10 : vector<1x128xf32> to vector<8x128xf32>
    %12 = arith.addf %9, %11 : vector<8x128xf32>
    %cst_11 = arith.constant 0.000000e+00 : f32
    %13 = vector.broadcast %cst_11 : f32 to vector<8x128xf32>
    %14 = arith.maximumf %12, %13 : vector<8x128xf32>
    %c0_12 = arith.constant 0 : index
    %c0_13 = arith.constant 0 : index
    %15 = vector.load %arg6[%c0_12, %c0_13] : memref<128x128xf32, #tpu.memory_space<vmem>>, vector<128x128xf32>
    %cst_14 = arith.constant dense<0.000000e+00> : vector<8x128xf32>
    %16 = tpu.matmul %14, %15, %cst_14 {dimension_numbers = #tpu.dot_dimension_numbers<[1], [0], [0], [1], [0, 0, 1, 1], [], []>} : vector<8x128xf32>, vector<128x128xf32>, vector<8x128xf32> -> vector<8x128xf32>
    %c0_15 = arith.constant 0 : index
    %c0_16 = arith.constant 0 : index
    %17 = vector.load %arg7[%c0_15, %c0_16] : memref<1x128xf32, #tpu.memory_space<vmem>>, vector<1x128xf32>
    %18 = vector.broadcast %17 : vector<1x128xf32> to vector<8x128xf32>
    %19 = arith.addf %16, %18 : vector<8x128xf32>
    %c0_17 = arith.constant 0 : index
    %c0_18 = arith.constant 0 : index
    %20 = vector.load %arg8[%c0_17, %c0_18] : memref<8x128xf32, #tpu.memory_space<vmem>>, vector<8x128xf32>
    tpu.vector_store %arg8[%c0_17, %c0_18], %19 {strides = array<i32>} : memref<8x128xf32, #tpu.memory_space<vmem>>, vector<8x128xf32>,
    return
  }
  func.func @transform_0(%arg0: i32) -> (i32, i32) {
    %c0_i32 = arith.constant 0 : i32
    %c0_i32_0 = arith.constant 0 : i32
    return %arg0, %c0_i32 : i32, i32
  }
  func.func @transform_1(%arg0: i32) -> (i32, i32) {
    %c0_i32 = arith.constant 0 : i32
    %c0_i32_0 = arith.constant 0 : i32
    %c0_i32_1 = arith.constant 0 : i32
    return %c0_i32, %c0_i32_0 : i32, i32
  }
  func.func @transform_2(%arg0: i32) -> (i32, i32) {
    %c0_i32 = arith.constant 0 : i32
    %c0_i32_0 = arith.constant 0 : i32
    %c0_i32_1 = arith.constant 0 : i32
    return %c0_i32, %c0_i32_0 : i32, i32
  }
  func.func @transform_3(%arg0: i32) -> (i32, i32) {
    %c0_i32 = arith.constant 0 : i32
    %c0_i32_0 = arith.constant 0 : i32
    %c0_i32_1 = arith.constant 0 : i32
    return %c0_i32, %c0_i32_0 : i32, i32
  }
  func.func @transform_4(%arg0: i32) -> (i32, i32) {
    %c0_i32 = arith.constant 0 : i32
    %c0_i32_0 = arith.constant 0 : i32
    %c0_i32_1 = arith.constant 0 : i32
    return %c0_i32, %c0_i32_0 : i32, i32
  }
  func.func @transform_5(%arg0: i32) -> (i32, i32) {
    %c0_i32 = arith.constant 0 : i32
    %c0_i32_0 = arith.constant 0 : i32
    %c0_i32_1 = arith.constant 0 : i32
    return %c0_i32, %c0_i32_0 : i32, i32
  }
  func.func @transform_6(%arg0: i32) -> (i32, i32) {
    %c0_i32 = arith.constant 0 : i32
    %c0_i32_0 = arith.constant 0 : i32
    %c0_i32_1 = arith.constant 0 : i32
    return %c0_i32, %c0_i32_0 : i32, i32
  }
  func.func @transform_7(%arg0: i32) -> (i32, i32) {
    %c0_i32 = arith.constant 0 : i32
    %c0_i32_0 = arith.constant 0 : i32
    return %arg0, %c0_i32 : i32, i32
  }
}

</mosaic_0001>

<bundles_post_ra>
// kernel: dqn_forward.1
= control target key start
LH: loop header
LB: loop body
LE: loop exit
PB: predicated region body
PF: predicated region fallthrough
CT: control target
= control target key end

     0   :  { %12 = vsyncpa [#allocation3], 0  ;;  %s481_s0 = inlined_call_operand.hbm [shape: f32[2,8], index: 0, kind: input, shape index: {}]   ;;  %s482_s1 = inlined_call_operand.hbm [shape: f32[8,128], index: 1, kind: input, shape index: {}]   ;;  %s483_s2 = inlined_call_operand.hbm [shape: f32[1,128], index: 2, kind: input, shape index: {}]   ;;  %s484_s3 = inlined_call_operand.hbm [shape: f32[128,128], index: 3, kind: input, shape index: {}]   ;;  %s485_s4 = inlined_call_operand.vmem [shape: f32[1,128], index: 4, kind: input, shape index: {}]   ;;  %s486_s5 = inlined_call_operand.hbm [shape: f32[128,128], index: 5, kind: input, shape index: {}]   ;;  %s487_s6 = inlined_call_operand.vmem [shape: f32[1,128], index: 6, kind: input, shape index: {}]   ;;  %s488_s7 = inlined_call_operand.hbm [shape: f32[2,128], index: 7, kind: output, shape index: {}]  }
   0x1   :  { %13 = vsyncpa [#allocation6], 0 }
   0x2   :  { %14 = vsyncpa [#allocation9], 0 }
   0x3   :  { %15 = vsyncpa [#allocation4], 0  ;;  %s34_s26 = sshll.u32 %s482_s1, 4  ;;  %s35_s26 = int_to_ptr.hbm [resolvable:$true] %s34_s26 }
   0x4   :  { %19 = vsyncadd [#allocation3], 96  ;;  %s401_s27 = smov [#allocation5]   ;;  %s55_s8 = sshll.u32 %s484_s3, 4  ;;  %s56_s8 = int_to_ptr.hbm [resolvable:$true] %s55_s8 }
   0x5   :  { %s36_s28 = sshll.u32 %s401_s27, 4  ;;  %s402_s9 = smov [#allocation8]   ;;  %s37_s28 = int_to_ptr.vmem [resolvable:$true] %s36_s28 }
   0x6   :  { %39 = dma.hbm_to_vmem [thread:$0]  %s35_s26, 128, %s37_s28, [#allocation6]  }
   0x7   :  { %s57_s10 = sshll.u32 %s402_s9, 4  ;;  %s403_s11 = smov 128   ;;  %s58_s10 = int_to_ptr.vmem [resolvable:$true] %s57_s10 }
   0x8   :  { %s404_s12 = smov 8   ;;  %s20_s1 = sshll.u32 %s481_s0, 4  ;;  %s21_s1 = int_to_ptr.hbm [resolvable:$true] %s20_s1 }
   0x9   :  { %63 = dma.hbm_to_vmem [thread:$0]  %s56_s8, 2048, %s58_s10, [#allocation9], %s403_s11, %s403_s11, %s404_s12  }
   0xa   :  { %s405_s15 = smov [#allocation2]   ;;  %s45_s3 = sshll.u32 %s483_s2, 4  ;;  %s46_s3 = int_to_ptr.hbm [resolvable:$true] %s45_s3 }
   0xb   :  { %s22_s16 = sshll.u32 %s405_s15, 4  ;;  %s406_s19 = smov 32   ;;  %s23_s16 = int_to_ptr.vmem [resolvable:$true] %s22_s16 }
   0xc   :  { %s407_s20 = smov 2   ;;  %s408_s21 = smov [#allocation7]  }
   0xd   :  { %28 = dma.hbm_to_vmem [thread:$0]  %s21_s1, 32, %s23_s16, [#allocation3], %s406_s19, %s406_s19, %s407_s20  }
   0xe   :  { %s47_s22 = sshll.u32 %s408_s21, 4  ;;  %s70_s0 = sshll.u32 %s486_s5, 4  ;;  %s48_s22 = int_to_ptr.vmem [resolvable:$true] %s47_s22  ;;  %s71_s0 = int_to_ptr.hbm [resolvable:$true] %s70_s0 }
   0xf   :  { %50 = dma.hbm_to_vmem [thread:$0]  %s46_s3, 16, %s48_s22, [#allocation6]  }
  0x10   :  { %s409_s25 = smov [#allocation10]  }
  0x11   :  { %s72_s26 = sshll.u32 %s409_s25, 4  ;;  %s73_s26 = int_to_ptr.vmem [resolvable:$true] %s72_s26 }
  0x12   :  { %78 = dma.hbm_to_vmem [thread:$0]  %s71_s0, 2048, %s73_s26, [#allocation9], %s403_s11, %s403_s11, %s404_s12  }
  0x13   :  { %393 = dma.done.wait [#allocation3], 128  }
  0x14   :  { %394 = vsyncadd [#allocation3], 4294967168 }
  0x15   :  { %395 = dma.done.wait [#allocation6], 144  }
  0x16   :  { %396 = vsyncadd [#allocation6], 4294967152 }
  0x17   :  { %397 = dma.done.wait [#allocation9], 4096  }
  0x18   :  { %398 = vsyncadd [#allocation9], 4294963200  ;;  %vm107_vm0 = vcmask 64512   ;;  %v102_v0 = vld [vmem:[#allocation5] sm:$0xff]  ;;  %v101_v1 = vld [vmem:[#allocation2] sm:$0xff] }
  0x19   :  { %v147_v2 = vld [vmem:[#allocation8 + $0x78] sm:$0xff]  ;;  %126 = vmatpush.msra.mxu0 %v102_v0  ;;  %v146_v3 = vld [vmem:[#allocation8 + $0x70] sm:$0xff]  ;;  %v145_v4 = vld [vmem:[#allocation8 + $0x68] sm:$0xff] }
  0x1a   :  { %152 = vmatpush.msra.mxu1 %v147_v2  ;;  %235 = vmatmul.msk.f32.vlgmr.msra.gmra.mxu0 %vm107_vm0, %v101_v1  ;;  %v144_v5 = vld [vmem:[#allocation8 + $0x60] sm:$0xff]  ;;  %v143_v6 = vld [vmem:[#allocation8 + $0x58] sm:$0xff]  ;;  %v142_v7 = vld [vmem:[#allocation8 + $0x50] sm:$0xff] }
  0x1b   :  { %v141_v8 = vld [vmem:[#allocation8 + $0x48] sm:$0xff]  ;;  %v140_v9 = vld [vmem:[#allocation8 + $0x40] sm:$0xff]  ;;  %v139_v10 = vld [vmem:[#allocation8 + $0x38] sm:$0xff] }
  0x1c   :  { %153 = vmatpush.msra.mxu1 %v146_v3  ;;  %v138_v11 = vld [vmem:[#allocation8 + $0x30] sm:$0xff]  ;;  %v137_v12 = vld [vmem:[#allocation8 + $0x28] sm:$0xff]  ;;  %v136_v13 = vld [vmem:[#allocation8 + $0x20] sm:$0xff] }
  0x1d   :  { %v135_v14 = vld [vmem:[#allocation8 + $0x18] sm:$0xff]  ;;  %v134_v15 = vld [vmem:[#allocation8 + $0x10] sm:$0xff]  ;;  %v133_v16 = vld [vmem:[#allocation8 + $0x8] sm:$0xff] }
  0x1e   :  { %154 = vmatpush.msra.mxu1 %v145_v4  ;;  %v132_v17 = vld [vmem:[#allocation8] sm:$0xff]  ;;  %v188_v18 = vld [vmem:[#allocation10 + $0x78] sm:$0xff]  ;;  %v187_v19 = vld [vmem:[#allocation10 + $0x70] sm:$0xff] }
  0x1f   :  { %193 = vmatpush.msra.mxu2 %v188_v18  ;;  %v186_v20 = vld [vmem:[#allocation10 + $0x68] sm:$0xff]  ;;  %v185_v21 = vld [vmem:[#allocation10 + $0x60] sm:$0xff]  ;;  %v184_v22 = vld [vmem:[#allocation10 + $0x58] sm:$0xff] }
  0x20   :  { %155 = vmatpush.msra.mxu1 %v144_v5  ;;  %v183_v23 = vld [vmem:[#allocation10 + $0x50] sm:$0xff]  ;;  %v182_v24 = vld [vmem:[#allocation10 + $0x48] sm:$0xff]  ;;  %v181_v25 = vld [vmem:[#allocation10 + $0x40] sm:$0xff] }
  0x21   :  { %194 = vmatpush.msra.mxu2 %v187_v19  ;;  %v180_v26 = vld [vmem:[#allocation10 + $0x38] sm:$0xff]  ;;  %v179_v27 = vld [vmem:[#allocation10 + $0x30] sm:$0xff]  ;;  %v178_v28 = vld [vmem:[#allocation10 + $0x28] sm:$0xff] }
  0x22   :  { %156 = vmatpush.msra.mxu1 %v143_v6  ;;  %v177_v29 = vld [vmem:[#allocation10 + $0x20] sm:$0xff]  ;;  %v176_v30 = vld [vmem:[#allocation10 + $0x18] sm:$0xff]  ;;  %v175_v35 = vld [vmem:[#allocation10 + $0x10] sm:$0xff] }
  0x23   :  { %195 = vmatpush.msra.mxu2 %v186_v20  ;;  %v246_v31 = vld [vmem:[#allocation7] ss:$0 sm:$0xff]  ;;  %v174_v36 = vld [vmem:[#allocation10 + $0x8] sm:$0xff]  ;;  %v173_v37 = vld [vmem:[#allocation10] sm:$0xff] }
  0x24   :  { %157 = vmatpush.msra.mxu1 %v142_v7  ;;  %v247_v38 = vld [vmem:[%s485_s4] ss:$0 sm:$0xff] }
  0x25   :  { %196 = vmatpush.msra.mxu2 %v185_v21  ;;  %v248_v42 = vld [vmem:[%s487_s6] ss:$0 sm:$0xff] }
  0x26   :  { %158 = vmatpush.msra.mxu1 %v141_v8 }
  0x27   :  { %197 = vmatpush.msra.mxu2 %v184_v22 }
  0x28   :  { %159 = vmatpush.msra.mxu1 %v140_v9 }
  0x29   :  { %198 = vmatpush.msra.mxu2 %v183_v23 }
  0x2a   :  { %160 = vmatpush.msra.mxu1 %v139_v10 }
  0x2b   :  { %199 = vmatpush.msra.mxu2 %v182_v24 }
  0x2c   :  { %161 = vmatpush.msra.mxu1 %v138_v11 }
  0x2d   :  { %200 = vmatpush.msra.mxu2 %v181_v25 }
  0x2e   :  { %162 = vmatpush.msra.mxu1 %v137_v12 }
  0x2f   :  { %201 = vmatpush.msra.mxu2 %v180_v26 }
  0x30   :  { %163 = vmatpush.msra.mxu1 %v136_v13 }
  0x31   :  { %202 = vmatpush.msra.mxu2 %v179_v27 }
  0x32   :  { %164 = vmatpush.msra.mxu1 %v135_v14 }
  0x33   :  { %203 = vmatpush.msra.mxu2 %v178_v28 }
  0x34   :  { %165 = vmatpush.msra.mxu1 %v134_v15 }
  0x35   :  { %204 = vmatpush.msra.mxu2 %v177_v29 }
  0x36   :  { %166 = vmatpush.msra.mxu1 %v133_v16 }
  0x37   :  { %205 = vmatpush.msra.mxu2 %v176_v30 }
  0x38   :  { %167 = vmatpush.msra.mxu1 %v132_v17 }
  0x39   :  { %206 = vmatpush.msra.mxu2 %v175_v35 }
  0x3b   :  { %207 = vmatpush.msra.mxu2 %v174_v36 }
  0x3d   :  { %208 = vmatpush.msra.mxu2 %v173_v37 }
  0x97   :  { %v128_v32 = vpop.f32.mrf.mxu0 }
  0x98   :  { %v129_v33 = vadd.f32 %v246_v31, %v128_v32 }
  0x9a   :  { %v131_v34 = vmax.f32 %v129_v33, 0.0 }
  0x9c   :  { %168 = vmatmul.f32.vlgmr.msra.gmra.mxu1 %v131_v34 }
 0x119   :  { %v169_v39 = vpop.f32.mrf.mxu1 }
 0x11a   :  { %v170_v40 = vadd.f32 %v247_v38, %v169_v39 }
 0x11c   :  { %v172_v41 = vmax.f32 %v170_v40, 0.0 }
 0x11e   :  { %209 = vmatmul.f32.vlgmr.msra.gmra.mxu2 %v172_v41 }
 0x1a1   :  { %v210_v43 = vpop.f32.mrf.mxu2 }
 0x1a2   :  { %v211_v44 = vadd.f32 %v248_v42, %v210_v43 }
 0x1a4   :  { %213 = vst [vmem:[#allocation11] sm:$0xff] %v211_v44 }
 0x1a5   :  { %217 = vsyncadd [#allocation4], 96  ;;  %s220_s8 = sshll.u32 %s488_s7, 4  ;;  %s410_s9 = smov [#allocation11]   ;;  %s221_s8 = int_to_ptr.hbm [resolvable:$true] %s220_s8 }
 0x1a6   :  { %s218_s10 = sshll.u32 %s410_s9, 4  ;;  %s219_s10 = int_to_ptr.vmem [resolvable:$true] %s218_s10 }
 0x1a7   :  { %226 = dma.vmem_to_hbm [thread:$0]  %s219_s10, 32, %s221_s8, [#allocation4], %s406_s19, %s406_s19, %s407_s20  }
 0x1a8   :  { %399 = dma.done.wait [#allocation4], 128  }
 0x1a9   :  { %400 = vsyncadd [#allocation4], 4294967168 }
 0x1aa   :  { %231 = vsyncpa [#allocation3], 1 }
 0x1ab   :  { %232 = vsyncpa [#allocation6], 1 }
 0x1ac   :  { %233 = vsyncpa [#allocation9], 1 }
 0x1ad   :  { %234 = vsyncpa [#allocation4], 1 }

</bundles_post_ra>
